<compile_context>
chip_gen: v6e
topology: v6e:2x2x1
jax: 0.10.0
libtpu: 0.0.40
codegen_flags: <defaults>
</compile_context>

<pallas_src>
import functools

import jax
import jax.numpy as jnp
from jax import lax
from jax.experimental import pallas as pl
from jax.experimental.pallas import tpu as pltpu


# ---------------- Pallas kernel bodies ----------------

def _im2col_matmul(x, w_flat, *, nb, kh_taps, oh, wpc, sh):
    """(NB, HP, WP*Cin) activations -> one (NB*OH, KH*WP*Cin) @ w_flat matmul."""
    taps = [lax.slice(x, (0, kh, 0), (nb, kh + (oh - 1) * sh + 1, wpc), (1, sh, 1))
            for kh in range(kh_taps)]                      # KH x (NB, OH, WPC)
    xs = jnp.concatenate(taps, axis=-1)                    # (NB, OH, KH*WPC) in VMEM
    xs = xs.reshape(nb * oh, kh_taps * wpc)
    return jnp.dot(xs, w_flat, preferred_element_type=jnp.float32)   # (NB*OH, OWC)


def _stats_to_scale_shift(col, r_mat, b_mat, gamma_l, beta_l, *, inv_m, eps):
    """col (2, OWC) = [col_sum; col_sumsq] -> (1, OWC) BN scale / shift.

    The per-channel reduction over the OW positions of each lane and the
    broadcast back to the (ow, cout)-interleaved lane layout use tiny one-hot
    matmuls, so everything stays lane-dense (no lane<->sublane relayouts).
    """
    ch = jnp.dot(col, r_mat, preferred_element_type=jnp.float32) * inv_m   # (2, Cout)
    st = jnp.dot(ch, b_mat, preferred_element_type=jnp.float32)            # (2, OWC)
    mean_l = st[0:1, :]
    # TODO(synk): E[x^2]-E[x]^2 can cancel catastrophically for very large
    # N*OH*OW; switch to a centered / Welford-style accumulation at scale.
    var_l = st[1:2, :] - mean_l * mean_l
    scale_l = gamma_l * lax.rsqrt(var_l + eps)
    shift_l = beta_l - mean_l * scale_l
    return scale_l, shift_l


def _fused_conv_bn_act_kernel(x_ref, w_ref, r_ref, b_ref, g_ref, bt_ref, o_ref, *,
                              nb, kh_taps, oh, owc, wpc, sh, inv_m, eps):
    """Single-pass: conv (implicit im2col) + BN batch stats + BN + ReLU."""
    acc = _im2col_matmul(x_ref[...], w_ref[...], nb=nb, kh_taps=kh_taps,
                         oh=oh, wpc=wpc, sh=sh)                       # (NB*OH, OWC)
    col = jnp.concatenate([jnp.sum(acc, axis=0, keepdims=True),
                           jnp.sum(acc * acc, axis=0, keepdims=True)], axis=0)
    scale_l, shift_l = _stats_to_scale_shift(col, r_ref[...], b_ref[...],
                                             g_ref[...], bt_ref[...],
                                             inv_m=inv_m, eps=eps)
    o_ref[...] = jnp.maximum(acc * scale_l + shift_l, 0.0).reshape(nb, oh, owc)


def _conv_stats_kernel(x_ref, w_ref, y_ref, st_ref, *, nb, kh_taps, oh, owc, wpc, sh):
    """Two-pass path, pass 1: conv + packed partial BN stats per grid step."""
    acc = _im2col_matmul(x_ref[...], w_ref[...], nb=nb, kh_taps=kh_taps,
                         oh=oh, wpc=wpc, sh=sh)
    y_ref[...] = acc.reshape(nb, oh, owc)
    st_ref[...] = jnp.concatenate(
        [jnp.sum(acc, axis=0, keepdims=True),
         jnp.sum(acc * acc, axis=0, keepdims=True)], axis=0).reshape(1, 2, owc)


def _bn_act_kernel(y_ref, st_ref, r_ref, b_ref, g_ref, bt_ref, o_ref, *, inv_m, eps):
    """Two-pass path, pass 2: BN epilogue computed in-kernel + scale/shift + ReLU."""
    col = jnp.sum(st_ref[...], axis=0)                                # (2, OWC)
    scale_l, shift_l = _stats_to_scale_shift(col, r_ref[...], b_ref[...],
                                             g_ref[...], bt_ref[...],
                                             inv_m=inv_m, eps=eps)
    o_ref[...] = jnp.maximum(y_ref[...] * scale_l + shift_l, 0.0)


# ---------------- Wrapper helpers ----------------

def _toeplitz_weights(w, wp, ow, sw, dtype):
    """(Cout, Cin, KH, KW) -> flattened (KH*WP*Cin, OW*Cout) block-Toeplitz weight.

    W[kh*WP*Cin + iw*Cin + ci, ow*Cout + co] = w[co, ci, kh, iw - ow*sw] when
    0 <= iw - ow*sw < KW, else 0.  One matmul against the KH-concatenated
    im2col rows then implements the whole conv with a lane-dense output.
    """
    cout, cin, khs, kws = w.shape
    w_t = jnp.transpose(w, (2, 3, 1, 0)).astype(dtype)          # (KH,KW,Cin,Cout)
    iw = jnp.arange(wp)
    onehot = (iw[None, None, :] ==
              (jnp.arange(ow)[None, :, None] * sw +
               jnp.arange(kws)[:, None, None])).astype(dtype)   # (KW, OW, WP)
    wt = jnp.einsum('koi,hkcd->hicod', onehot, w_t)             # (KH,WP,Cin,OW,Cout)
    return wt.reshape(khs * wp * cin, ow * cout)


def _vmem_budgets():
    """Generation-aware (per-step budget, vmem_limit_bytes)."""
    cap = 64 << 20                      # conservative default (v7x per-core VMEM)
    try:
        info = pltpu.get_tpu_info()
        for attr in ("vmem_capacity_bytes", "vmem_size_bytes", "vmem_bytes"):
            if hasattr(info, attr):
                cap = int(getattr(info, attr))
                break
    except Exception:
        pass
    step_budget = min((cap * 3) // 8, 48 << 20)   # ~48 MiB on 128 MiB, ~24 MiB on 64 MiB
    vmem_limit = min((cap * 3) // 4, 96 << 20)
    return step_budget, vmem_limit


def _images_per_step(n, hp, wpc, oh, owc, k_flat, fixed_bytes, budget_bytes):
    # Per-step VMEM (f32): double-buffered input/output tiles + in-VMEM im2col
    # copy + matmul result.  Largest divisor of N that fits the budget.
    per_img = 4 * (2 * hp * wpc + 2 * oh * owc + oh * k_flat + oh * owc)
    nb = 1
    for cand in range(1, n + 1):
        if n % cand == 0 and fixed_bytes + cand * per_img <= budget_bytes:
            nb = cand
    return nb


def _row_tile(rows, owc, budget_bytes):
    # Multiple-of-8 row tile; partial tail blocks are handled by Pallas masking
    # (never fall back to a whole-slab block).
    if rows <= 8:
        return rows
    max_rows = max(8, budget_bytes // (4 * owc * 4))   # in + out, double-buffered
    tr = min(rows, 1024, max_rows)
    tr -= tr % 8
    return max(tr, 8)


def _buffered_once(block_shape, index_map):
    # Constant-index input (Toeplitz weight): single-buffer it so it is not
    # held twice in VMEM.  Fall back to a plain BlockSpec on older JAX.
    try:
        return pl.BlockSpec(block_shape, index_map, pipeline_mode=pl.Buffered(1))
    except Exception:
        return pl.BlockSpec(block_shape, index_map)


# ---------------- Forward ----------------

def conv_bn_act(x_nchw, w, bias, gamma, beta, *, padding=(1, 1), stride=(1, 1),
                eps=1e-5, groups=1):
    """Forward of ConvBNAct(in_ch, out_ch, ReLU, k, padding), training-mode BN."""
    # Conv bias cancels exactly under training-mode BatchNorm.
    # TODO(synk): re-add the bias if eval-mode (running-stats) BN is ever used.
    del bias
    assert groups == 1  # TODO(synk): grouped conv (groups > 1) not implemented.
    N, Cin, H, W = x_nchw.shape
    Cout, Cin_w, KH, KW = w.shape
    assert Cin_w == Cin
    ph, pw = padding
    sh, sw = stride
    OH = (H + 2 * ph - KH) // sh + 1
    OW = (W + 2 * pw - KW) // sw + 1
    HP, WP = H + 2 * ph, W + 2 * pw
    WPC, OWC, KFLAT = WP * Cin, OW * Cout, KH * WP * Cin

    # TODO(synk): bf16 x/weight (f32 accumulation) would ~2x MXU throughput on
    # v6e/v7x and halve HBM bytes, but would not meet the 1e-4 check vs f32.
    dtype = jnp.float32

    # NCHW -> padded, lane-dense NHWC at the module boundary only.
    # TODO(synk): zero-pad inside kernel 1 (DMA unpadded rows) to save one
    # full-tensor HBM round trip; keep NHWC output if the consumer allows it.
    x = jnp.transpose(x_nchw, (0, 2, 3, 1)).astype(dtype)
    xp = jnp.pad(x, ((0, 0), (ph, ph), (pw, pw), (0, 0))).reshape(N, HP, WPC)
    # TODO(synk): tile the OW axis of the Toeplitz weight for large OW*Cout
    # (v7x 64 MiB VMEM) and to cap the ~WP/KW wasted-FLOP ratio.
    wt = _toeplitz_weights(w, WP, OW, sw, dtype)                   # (KFLAT, OWC)
    # One-hot reduce / broadcast matrices between the (ow, cout)-interleaved
    # lane layout and per-channel vectors (for in-kernel BN statistics).
    r_mat = jnp.tile(jnp.eye(Cout, dtype=dtype), (OW, 1))          # (OWC, Cout)
    b_mat = r_mat.T                                                # (Cout, OWC)
    gamma_l = jnp.tile(gamma.astype(dtype), OW).reshape(1, OWC)
    beta_l = jnp.tile(beta.astype(dtype), OW).reshape(1, OWC)
    inv_m = 1.0 / float(N * OH * OW)

    step_budget, vmem_limit = _vmem_budgets()
    fixed = 4 * (KFLAT * OWC + 2 * OWC * Cout + 4 * OWC)           # weight (x1) + tiny mats
    NB = _images_per_step(N, HP, WPC, OH, OWC, KFLAT, fixed, step_budget)
    G = N // NB

    common = dict(nb=NB, kh_taps=KH, oh=OH, owc=OWC, wpc=WPC, sh=sh)
    w_spec = _buffered_once((KFLAT, OWC), lambda i: (0, 0))
    small_specs = [pl.BlockSpec((OWC, Cout), lambda i: (0, 0)),
                   pl.BlockSpec((Cout, OWC), lambda i: (0, 0)),
                   pl.BlockSpec((1, OWC), lambda i: (0, 0)),
                   pl.BlockSpec((1, OWC), lambda i: (0, 0))]

    if G == 1:
        # Whole batch fits one VMEM-budgeted step: fully fused single pass,
        # the conv slab never round-trips HBM and there is no second launch.
        # TODO(synk): on v7x (2 TensorCores) a single grid step leaves one core
        # idle; split the fused step over an OH-row parallel axis there.
        kern = functools.partial(_fused_conv_bn_act_kernel, inv_m=inv_m, eps=eps,
                                 **common)
        y3 = pl.pallas_call(
            kern,
            out_shape=jax.ShapeDtypeStruct((N, OH, OWC), jnp.float32),
            grid=(1,),
            in_specs=[pl.BlockSpec((N, HP, WPC), lambda i: (0, 0, 0)), w_spec]
                     + small_specs,
            out_specs=pl.BlockSpec((N, OH, OWC), lambda i: (0, 0, 0)),
            compiler_params=pltpu.CompilerParams(
                dimension_semantics=("arbitrary",),
                vmem_limit_bytes=vmem_limit),
        )(xp, wt, r_mat, b_mat, gamma_l, beta_l)
        return y3.reshape(N, OH, OW, Cout).transpose(0, 3, 1, 2)

    # ---- two-pass path: conv + packed partial stats, then BN + ReLU ----
    kern1 = functools.partial(_conv_stats_kernel, **common)
    y3, stats = pl.pallas_call(
        kern1,
        out_shape=(jax.ShapeDtypeStruct((N, OH, OWC), jnp.float32),
                   jax.ShapeDtypeStruct((G, 2, OWC), jnp.float32)),
        grid=(G,),
        in_specs=[pl.BlockSpec((NB, HP, WPC), lambda i: (i, 0, 0)), w_spec],
        out_specs=(pl.BlockSpec((NB, OH, OWC), lambda i: (i, 0, 0)),
                   pl.BlockSpec((1, 2, OWC), lambda i: (i, 0, 0))),
        compiler_params=pltpu.CompilerParams(
            dimension_semantics=("parallel",),
            vmem_limit_bytes=vmem_limit),
    )(xp, wt)

    R = N * OH
    TR = _row_tile(R, OWC, step_budget)
    kern2 = functools.partial(_bn_act_kernel, inv_m=inv_m, eps=eps)
    out2 = pl.pallas_call(
        kern2,
        out_shape=jax.ShapeDtypeStruct((R, OWC), jnp.float32),
        grid=(pl.cdiv(R, TR),),
        in_specs=[pl.BlockSpec((TR, OWC), lambda i: (i, 0)),
                  pl.BlockSpec((G, 2, OWC), lambda i: (0, 0, 0))] + small_specs,
        out_specs=pl.BlockSpec((TR, OWC), lambda i: (i, 0)),
        input_output_aliases={0: 0},   # conv slab is dead after this pass
        compiler_params=pltpu.CompilerParams(
            dimension_semantics=("parallel",),
            vmem_limit_bytes=vmem_limit),
    )(y3.reshape(R, OWC), stats, r_mat, b_mat, gamma_l, beta_l)

    return out2.reshape(N, OH, OW, Cout).transpose(0, 3, 1, 2)


# ---------------- Pure-JAX reference (for verification) ----------------

def _reference(x_nchw, w, bias, gamma, beta, *, padding, stride, eps=1e-5):
    x = jnp.transpose(x_nchw, (0, 2, 3, 1)).astype(jnp.float32)
    w_hwio = jnp.transpose(w, (2, 3, 1, 0)).astype(jnp.float32)
    y = lax.conv_general_dilated(
        x, w_hwio, window_strides=stride,
        padding=[(padding[0], padding[0]), (padding[1], padding[1])],
        dimension_numbers=("NHWC", "HWIO", "NHWC"))
    y = y + bias.reshape(1, 1, 1, -1)
    mean = jnp.mean(y, axis=(0, 1, 2), keepdims=True)
    var = jnp.mean((y - mean) ** 2, axis=(0, 1, 2), keepdims=True)  # biased
    y = (y - mean) / jnp.sqrt(var + eps)
    y = y * gamma.reshape(1, 1, 1, -1) + beta.reshape(1, 1, 1, -1)
    y = jnp.maximum(y, 0.0)
    return jnp.transpose(y, (0, 3, 1, 2))


if __name__ == "__main__":
    # ConvBNAct(in_ch=4, out_ch=8, act_fn=nn.ReLU(), kernel_size=3, padding=1)
    N, Cin, H, W = 2, 4, 16, 16
    Cout, KH, KW = 8, 3, 3
    padding, stride = (1, 1), (1, 1)

    key = jax.random.PRNGKey(0)
    kx, kw_, kb, kg, kbe = jax.random.split(key, 5)
    x = jax.random.normal(kx, (N, Cin, H, W), dtype=jnp.float32)
    w = jax.random.normal(kw_, (Cout, Cin, KH, KW), dtype=jnp.float32) * 0.1
    bias = jax.random.normal(kb, (Cout,), dtype=jnp.float32) * 0.1
    gamma = 1.0 + 0.1 * jax.random.normal(kg, (Cout,), dtype=jnp.float32)
    beta = 0.1 * jax.random.normal(kbe, (Cout,), dtype=jnp.float32)

    out = conv_bn_act(x, w, bias, gamma, beta, padding=padding, stride=stride)
    out = jax.block_until_ready(out)

    ref = _reference(x, w, bias, gamma, beta, padding=padding, stride=stride)
    assert out.shape == (N, Cout, H, W), out.shape
    err = float(jnp.max(jnp.abs(out - ref)))
    assert err < 1e-4, err
    print("KERNEL_OK")
</pallas_src>

<mosaic_0001>
module attributes {stable_mosaic.version = 11 : i64} {
  func.func @_fused_conv_bn_act_kernel(%arg0: i32, %arg1: memref<2x18x72xf32, #tpu.memory_space<vmem>>, %arg2: memref<216x128xf32, #tpu.memory_space<vmem>>, %arg3: memref<128x8xf32, #tpu.memory_space<vmem>>, %arg4: memref<8x128xf32, #tpu.memory_space<vmem>>, %arg5: memref<1x128xf32, #tpu.memory_space<vmem>>, %arg6: memref<1x128xf32, #tpu.memory_space<vmem>>, %arg7: memref<2x16x128xf32, #tpu.memory_space<vmem>>) attributes {dimension_semantics = [#tpu.dimension_semantics<arbitrary>], iteration_bounds = array<i64: 1>, scalar_prefetch = 0 : i64, scratch_operands = 0 : i64, tpu.core_type = #tpu.core_type<tc>, window_params = [{pipeline_mode = #tpu.pipeline_mode<synchronous>, transform_indices = @transform_0, window_bounds = array<i64: 2, 18, 72>}, {pipeline_mode = #tpu.pipeline_mode<synchronous>, transform_indices = @transform_1, window_bounds = array<i64: 216, 128>}, {pipeline_mode = #tpu.pipeline_mode<synchronous>, transform_indices = @transform_2, window_bounds = array<i64: 128, 8>}, {pipeline_mode = #tpu.pipeline_mode<synchronous>, transform_indices = @transform_3, window_bounds = array<i64: 8, 128>}, {pipeline_mode = #tpu.pipeline_mode<synchronous>, transform_indices = @transform_4, window_bounds = array<i64: 1, 128>}, {pipeline_mode = #tpu.pipeline_mode<synchronous>, transform_indices = @transform_5, window_bounds = array<i64: 1, 128>}, {pipeline_mode = #tpu.pipeline_mode<synchronous>, transform_indices = @transform_6, window_bounds = array<i64: 2, 16, 128>}]} {
    %c0 = arith.constant 0 : index
    %c0_0 = arith.constant 0 : index
    %c0_1 = arith.constant 0 : index
    %0 = vector.load %arg1[%c0, %c0_0, %c0_1] : memref<2x18x72xf32, #tpu.memory_space<vmem>>, vector<2x18x72xf32>
    %c0_2 = arith.constant 0 : index
    %c0_3 = arith.constant 0 : index
    %1 = vector.load %arg2[%c0_2, %c0_3] : memref<216x128xf32, #tpu.memory_space<vmem>>, vector<216x128xf32>
    %2 = vector.extract_strided_slice %0 {offsets = [0, 0, 0], sizes = [2, 16, 72], strides = [1, 1, 1]} : vector<2x18x72xf32> to vector<2x16x72xf32>
    %3 = vector.extract_strided_slice %0 {offsets = [0, 1, 0], sizes = [2, 16, 72], strides = [1, 1, 1]} : vector<2x18x72xf32> to vector<2x16x72xf32>
    %4 = vector.extract_strided_slice %0 {offsets = [0, 2, 0], sizes = [2, 16, 72], strides = [1, 1, 1]} : vector<2x18x72xf32> to vector<2x16x72xf32>
    %5 = tpu.concatenate %2, %3, %4 in 2 : vector<2x16x72xf32>, vector<2x16x72xf32>, vector<2x16x72xf32> -> vector<2x16x216xf32>
    %6 = vector.shape_cast %5 : vector<2x16x216xf32> to vector<32x216xf32>
    %cst = arith.constant dense<0.000000e+00> : vector<32x128xf32>
    %7 = tpu.matmul %6, %1, %cst {dimension_numbers = #tpu.dot_dimension_numbers<[1], [0], [0], [1], [0, 0, 1, 1], [], []>} : vector<32x216xf32>, vector<216x128xf32>, vector<32x128xf32> -> vector<32x128xf32>
    %cst_4 = arith.constant dense<0.000000e+00> : vector<128xf32>
    %8 = vector.multi_reduction <add>, %7, %cst_4 [0] : vector<32x128xf32> to vector<128xf32>
    %9 = vector.shape_cast %8 : vector<128xf32> to vector<1x128xf32>
    %10 = arith.mulf %7, %7 : vector<32x128xf32>
    %cst_5 = arith.constant dense<0.000000e+00> : vector<128xf32>
    %11 = vector.multi_reduction <add>, %10, %cst_5 [0] : vector<32x128xf32> to vector<128xf32>
    %12 = vector.shape_cast %11 : vector<128xf32> to vector<1x128xf32>
    %13 = tpu.concatenate %9, %12 in 0 : vector<1x128xf32>, vector<1x128xf32> -> vector<2x128xf32>
    %c0_6 = arith.constant 0 : index
    %c0_7 = arith.constant 0 : index
    %14 = vector.load %arg3[%c0_6, %c0_7] : memref<128x8xf32, #tpu.memory_space<vmem>>, vector<128x8xf32>
    %c0_8 = arith.constant 0 : index
    %c0_9 = arith.constant 0 : index
    %15 = vector.load %arg4[%c0_8, %c0_9] : memref<8x128xf32, #tpu.memory_space<vmem>>, vector<8x128xf32>
    %c0_10 = arith.constant 0 : index
    %c0_11 = arith.constant 0 : index
    %16 = vector.load %arg5[%c0_10, %c0_11] : memref<1x128xf32, #tpu.memory_space<vmem>>, vector<1x128xf32>
    %c0_12 = arith.constant 0 : index
    %c0_13 = arith.constant 0 : index
    %17 = vector.load %arg6[%c0_12, %c0_13] : memref<1x128xf32, #tpu.memory_space<vmem>>, vector<1x128xf32>
    %cst_14 = arith.constant dense<0.000000e+00> : vector<2x8xf32>
    %18 = tpu.matmul %13, %14, %cst_14 {dimension_numbers = #tpu.dot_dimension_numbers<[1], [0], [0], [1], [0, 0, 1, 1], [], []>} : vector<2x128xf32>, vector<128x8xf32>, vector<2x8xf32> -> vector<2x8xf32>
    %cst_15 = arith.constant 0.001953125 : f32
    %19 = vector.broadcast %cst_15 : f32 to vector<2x8xf32>
    %20 = arith.mulf %18, %19 : vector<2x8xf32>
    %cst_16 = arith.constant dense<0.000000e+00> : vector<2x128xf32>
    %21 = tpu.matmul %20, %15, %cst_16 {dimension_numbers = #tpu.dot_dimension_numbers<[1], [0], [0], [1], [0, 0, 1, 1], [], []>} : vector<2x8xf32>, vector<8x128xf32>, vector<2x128xf32> -> vector<2x128xf32>
    %22 = vector.extract_strided_slice %21 {offsets = [0, 0], sizes = [1, 128], strides = [1, 1]} : vector<2x128xf32> to vector<1x128xf32>
    %23 = vector.extract_strided_slice %21 {offsets = [1, 0], sizes = [1, 128], strides = [1, 1]} : vector<2x128xf32> to vector<1x128xf32>
    %24 = arith.mulf %22, %22 : vector<1x128xf32>
    %25 = arith.subf %23, %24 : vector<1x128xf32>
    %cst_17 = arith.constant 9.99999974E-6 : f32
    %26 = vector.broadcast %cst_17 : f32 to vector<1x128xf32>
    %27 = arith.addf %25, %26 : vector<1x128xf32>
    %28 = math.rsqrt %27 : vector<1x128xf32>
    %29 = arith.mulf %16, %28 : vector<1x128xf32>
    %30 = arith.mulf %22, %29 : vector<1x128xf32>
    %31 = arith.subf %17, %30 : vector<1x128xf32>
    %32 = vector.broadcast %29 : vector<1x128xf32> to vector<32x128xf32>
    %33 = arith.mulf %7, %32 : vector<32x128xf32>
    %34 = vector.broadcast %31 : vector<1x128xf32> to vector<32x128xf32>
    %35 = arith.addf %33, %34 : vector<32x128xf32>
    %cst_18 = arith.constant 0.000000e+00 : f32
    %36 = vector.broadcast %cst_18 : f32 to vector<32x128xf32>
    %37 = arith.maximumf %35, %36 : vector<32x128xf32>
    %38 = vector.shape_cast %37 : vector<32x128xf32> to vector<2x16x128xf32>
    %c0_19 = arith.constant 0 : index
    %c0_20 = arith.constant 0 : index
    %c0_21 = arith.constant 0 : index
    %39 = vector.load %arg7[%c0_19, %c0_20, %c0_21] : memref<2x16x128xf32, #tpu.memory_space<vmem>>, vector<2x16x128xf32>
    tpu.vector_store %arg7[%c0_19, %c0_20, %c0_21], %38 {strides = array<i32>} : memref<2x16x128xf32, #tpu.memory_space<vmem>>, vector<2x16x128xf32>,
    return
  }
  func.func @transform_0(%arg0: i32) -> (i32, i32, i32) {
    %c0_i32 = arith.constant 0 : i32
    %c0_i32_0 = arith.constant 0 : i32
    %c0_i32_1 = arith.constant 0 : i32
    %c0_i32_2 = arith.constant 0 : i32
    return %c0_i32, %c0_i32_0, %c0_i32_1 : i32, i32, i32
  }
  func.func @transform_1(%arg0: i32) -> (i32, i32) {
    %c0_i32 = arith.constant 0 : i32
    %c0_i32_0 = arith.constant 0 : i32
    %c0_i32_1 = arith.constant 0 : i32
    return %c0_i32, %c0_i32_0 : i32, i32
  }
  func.func @transform_2(%arg0: i32) -> (i32, i32) {
    %c0_i32 = arith.constant 0 : i32
    %c0_i32_0 = arith.constant 0 : i32
    %c0_i32_1 = arith.constant 0 : i32
    return %c0_i32, %c0_i32_0 : i32, i32
  }
  func.func @transform_3(%arg0: i32) -> (i32, i32) {
    %c0_i32 = arith.constant 0 : i32
    %c0_i32_0 = arith.constant 0 : i32
    %c0_i32_1 = arith.constant 0 : i32
    return %c0_i32, %c0_i32_0 : i32, i32
  }
  func.func @transform_4(%arg0: i32) -> (i32, i32) {
    %c0_i32 = arith.constant 0 : i32
    %c0_i32_0 = arith.constant 0 : i32
    %c0_i32_1 = arith.constant 0 : i32
    return %c0_i32, %c0_i32_0 : i32, i32
  }
  func.func @transform_5(%arg0: i32) -> (i32, i32) {
    %c0_i32 = arith.constant 0 : i32
    %c0_i32_0 = arith.constant 0 : i32
    %c0_i32_1 = arith.constant 0 : i32
    return %c0_i32, %c0_i32_0 : i32, i32
  }
  func.func @transform_6(%arg0: i32) -> (i32, i32, i32) {
    %c0_i32 = arith.constant 0 : i32
    %c0_i32_0 = arith.constant 0 : i32
    %c0_i32_1 = arith.constant 0 : i32
    %c0_i32_2 = arith.constant 0 : i32
    return %c0_i32, %c0_i32_0, %c0_i32_1 : i32, i32, i32
  }
}

</mosaic_0001>

<bundles_post_ra>
// kernel: tpu_custom_call.1
= control target key start
LH: loop header
LB: loop body
LE: loop exit
PB: predicated region body
PF: predicated region fallthrough
CT: control target
= control target key end

     0   :  { %11 = vsyncpa [#allocation3], 0  ;;  %s915_s0 = inlined_call_operand.vmem [shape: f32[2,18,72], index: 0, kind: input, shape index: {}]   ;;  %s916_s1 = inlined_call_operand.vmem [shape: f32[216,128], index: 1, kind: input, shape index: {}]   ;;  %s917_s2 = inlined_call_operand.vmem [shape: f32[128,8], index: 2, kind: input, shape index: {}]   ;;  %s918_s3 = inlined_call_operand.hbm [shape: f32[8,128], index: 3, kind: input, shape index: {}]   ;;  %s919_s4 = inlined_call_operand.vmem [shape: f32[1,128], index: 4, kind: input, shape index: {}]   ;;  %s920_s5 = inlined_call_operand.vmem [shape: f32[1,128], index: 5, kind: input, shape index: {}]   ;;  %s921_s6 = inlined_call_operand.hbm [shape: f32[2,16,128], index: 6, kind: output, shape index: {}]  }
   0x1   :  { %12 = vsyncpa [#allocation4], 0  ;;  %s608_s21 = smov [#allocation2]  }
   0x2   :  { %s25_s22 = sshll.u32 %s608_s21, 4  ;;  %s26_s22 = int_to_ptr.vmem [resolvable:$true] %s25_s22 }
   0x3   :  { %s572_s23 = scalar_lea.vmem %s26_s22, 128  ;;  %p577_p1 = scmp.lt.s32.totalorder %s26_s22, %s26_s22 }
   0x4   :  { %p573_p0 = scmp.ne.s32.totalorder %s26_s22, %s572_s23  ;;  %p578_p2 = scmp.lt.s32.totalorder %s572_s23, %s572_s23 }
   0x6   :  { %p579_p3 = por %p578_p2, %p577_p1 }
   0x8   :  { %p580_p4 = pnand %p579_p3, %p573_p0 }
   0xa   :  { %583 = shalt.err (!%p580_p4)
}
   0xb   :  { %28 = dma.hbm_to_vmem [thread:$0]  %s918_s3, 128, %s26_s22, [#allocation3]  }
   0xc   :  { %604 = dma.done.wait [#allocation3], 128  }
   0xd   :  { %605 = vsyncadd [#allocation3], 4294967168  ;;  %v609_v0 = vmov 0.0   ;;  %v660_v1 = vld [vmem:[%s915_s0 + $0x8] sm:$0xff]  ;;  %v38_v2 = vld [vmem:[%s915_s0 + $0x10] sm:$0x3] }
   0xe   :  { %144 = vmatprep.subr.mxu0 %v609_v0  ;;  %513 = vmatprep.subr.mxu1 %v609_v0  ;;  %vm75_vm0 = vcmask 1046528   ;;  %v668_v3 = vld [vmem:[%s915_s0] sm:$0xff]  ;;  %v77_v4 = vrot.slane %v660_v1, 1  ;;  %v79_v5 = vrot.slane %v38_v2, 1  ;;  %v100_v7 = vrot.slane %v660_v1, 2  ;;  %v676_v8 = vld [vmem:[%s915_s0 + $0x18] sm:$0xff] }
   0xf   :  { %v76_v6 = vrot.slane %v668_v3, 1  ;;  %v681_v9 = vld [vmem:[%s915_s0 + $0x20] sm:$0xff]  ;;  %vm98_vm1 = vcmask 1045504   ;;  %v102_v10 = vrot.slane %v38_v2, 2  ;;  %v99_v11 = vrot.slane %v668_v3, 2  ;;  %v57_v14 = vld [vmem:[%s916_s1 + $0x78] sm:$0xff] }
  0x10   :  { %v80_v12 = vsel %vm75_vm0, %v77_v4, %v79_v5  ;;  %s610_s13 = smov 72   ;;  %v104_v15 = vrot.slane %v676_v8, 2  ;;  %v105_v16 = vrot.slane %v681_v9, 2  ;;  %v56_v17 = vld [vmem:[%s916_s1 + $0x70] sm:$0xff]  ;;  %v81_v20 = vrot.slane %v676_v8, 1  ;;  %145 = vmatpush1.msra.mxu0 %v57_v14  ;;  %v55_v23 = vld [vmem:[%s916_s1 + $0x68] sm:$0xff] }
  0x11   :  { %v78_v13 = vsel %vm75_vm0, %v76_v6, %v77_v4  ;;  %88 = vrot.lane.b32.xlu1 %v80_v12, %s610_s13  ;;  %v103_v18 = vsel %vm98_vm1, %v100_v7, %v102_v10  ;;  %v101_v19 = vsel %vm98_vm1, %v99_v11, %v100_v7  ;;  %v82_v21 = vrot.slane %v681_v9, 1  ;;  %v41_v22 = vld [vmem:[%s915_s0 + $0x28] sm:$0x3]  ;;  %146 = vmatprep.subr.mxu0 %v609_v0  ;;  %s611_s20 = smov 16   ;;  %v54_v28 = vld [vmem:[%s916_s1 + $0x60] sm:$0xff]  ;;  %v53_v29 = vld [vmem:[%s916_s1 + $0x58] sm:$0xff] }
  0x12   :  { %86 = vrot.lane.b32.xlu0 %v78_v13, %s610_s13  ;;  %147 = vmatpush1.msra.mxu0 %v56_v17  ;;  %v106_v24 = vsel %vm98_vm1, %v104_v15, %v105_v16  ;;  %v107_v26 = vrot.slane %v41_v22, 2  ;;  %v84_v27 = vrot.slane %v41_v22, 1  ;;  %v268_v32 = vld [vmem:[%s917_s2 + $0x78] sm:$0xff]  ;;  %v52_v33 = vld [vmem:[%s916_s1 + $0x50] sm:$0xff]  ;;  %v51_v34 = vld [vmem:[%s916_s1 + $0x48] sm:$0xff]  ;;  %vm126_vm2 = vcmask 130048  }
  0x13   :  { %v83_v25 = vsel %vm75_vm0, %v81_v20, %v82_v21  ;;  %148 = vmatprep.subr.mxu0 %v609_v0  ;;  %514 = vmatpush3.msra.mxu1 %v268_v32  ;;  %v50_v35 = vld [vmem:[%s916_s1 + $0x40] sm:$0xff]  ;;  %v49_v36 = vld [vmem:[%s916_s1 + $0x38] sm:$0xff]  ;;  %v48_v37 = vld [vmem:[%s916_s1 + $0x30] sm:$0xff]  ;;  %vm131_vm3 = vcmask 719872   ;;  %vm121_vm4 = vcmask 588800   ;;  %vm612_vm5 = vmmov 0  }
  0x14   :  { %149 = vmatpush1.msra.mxu0 %v55_v23  ;;  %v108_v30 = vsel %vm98_vm1, %v105_v16, %v107_v26  ;;  %v85_v31 = vsel %vm75_vm0, %v82_v21, %v84_v27  ;;  %515 = vmatprep.subr.mxu1 %v609_v0  ;;  %v47_v38 = vld [vmem:[%s916_s1 + $0x28] sm:$0xff]  ;;  %v46_v39 = vld [vmem:[%s916_s1 + $0x20] sm:$0xff]  ;;  %v45_v40 = vld [vmem:[%s916_s1 + $0x18] sm:$0xff]  ;;  %vm251_vm6 = vcmask 1040384   ;;  %vm343_vm7 = vcmask 64512   ;;  %s614_s23 = smov [#allocation5]  }
  0x15   :  { %111 = vrot.lane.b32.xlu1 %v103_v18, %s611_s20  ;;  %150 = vmatprep.subr.mxu0 %v609_v0  ;;  %v44_v41 = vld [vmem:[%s916_s1 + $0x10] sm:$0xff]  ;;  %v43_v42 = vld [vmem:[%s916_s1 + $0x8] sm:$0xff]  ;;  %v42_v43 = vld [vmem:[%s916_s1] sm:$0xff]  ;;  %s477_s24 = sshll.u32 %s614_s23, 4  ;;  %s478_s24 = int_to_ptr.vmem [resolvable:$true] %s477_s24 }
  0x16   :  { %109 = vrot.lane.b32.xlu0 %v101_v19, %s611_s20  ;;  %151 = vmatpush1.msra.mxu0 %v54_v28  ;;  %v68_v44 = vld [vmem:[%s916_s1 + $0xd0] sm:$0xff]  ;;  %v67_v45 = vld [vmem:[%s916_s1 + $0xc8] sm:$0xff]  ;;  %v66_v46 = vld [vmem:[%s916_s1 + $0xc0] sm:$0xff]  ;;  %p589_p6 = scmp.lt.s32.totalorder %s478_s24, %s478_s24 }
  0x17   :  { %152 = vmatprep.subr.mxu0 %v609_v0  ;;  %v65_v47 = vld [vmem:[%s916_s1 + $0xb8] sm:$0xff]  ;;  %v64_v48 = vld [vmem:[%s916_s1 + $0xb0] sm:$0xff]  ;;  %v63_v49 = vld [vmem:[%s916_s1 + $0xa8] sm:$0xff]  ;;  %545 = vmatprep.mubr.msk.f32.mxu1 %vm612_vm5, %v609_v0 }
  0x18   :  { %153 = vmatpush1.msra.mxu0 %v53_v29  ;;  %v62_v50 = vld [vmem:[%s916_s1 + $0xa0] sm:$0xff]  ;;  %v61_v51 = vld [vmem:[%s916_s1 + $0x98] sm:$0xff]  ;;  %v60_v52 = vld [vmem:[%s916_s1 + $0x90] sm:$0xff] }
  0x19   :  { %113 = vrot.lane.b32.xlu1 %v106_v24, %s611_s20  ;;  %154 = vmatprep.subr.mxu0 %v609_v0  ;;  %v59_v53 = vld [vmem:[%s916_s1 + $0x88] sm:$0xff]  ;;  %v58_v54 = vld [vmem:[%s916_s1 + $0x80] sm:$0xff]  ;;  %v263_v12 = vld [vmem:[%s917_s2 + $0x50] sm:$0xff] }
  0x1a   :  { %90 = vrot.lane.b32.xlu0 %v83_v25, %s610_s13  ;;  %155 = vmatpush1.msra.mxu0 %v52_v33  ;;  %v265_v11 = vld [vmem:[%s917_s2 + $0x60] sm:$0xff]  ;;  %v262_v13 = vld [vmem:[%s917_s2 + $0x48] sm:$0xff]  ;;  %v260_v15 = vld [vmem:[%s917_s2 + $0x38] sm:$0xff] }
  0x1b   :  { %156 = vmatprep.subr.mxu0 %v609_v0  ;;  %v261_v14 = vld [vmem:[%s917_s2 + $0x40] sm:$0xff]  ;;  %v259_v16 = vld [vmem:[%s917_s2 + $0x30] sm:$0xff]  ;;  %v258_v17 = vld [vmem:[%s917_s2 + $0x28] sm:$0xff] }
  0x1c   :  { %157 = vmatpush1.msra.mxu0 %v51_v34  ;;  %v257_v18 = vld [vmem:[%s917_s2 + $0x20] sm:$0xff]  ;;  %v256_v19 = vld [vmem:[%s917_s2 + $0x18] sm:$0xff]  ;;  %v255_v20 = vld [vmem:[%s917_s2 + $0x10] sm:$0xff] }
  0x1d   :  { %115 = vrot.lane.b32.xlu1 %v108_v30, %s611_s20  ;;  %158 = vmatprep.subr.mxu0 %v609_v0  ;;  %v254_v21 = vld [vmem:[%s917_s2 + $0x8] sm:$0xff]  ;;  %v253_v22 = vld [vmem:[%s917_s2] sm:$0xff] }
  0x1e   :  { %92 = vrot.lane.b32.xlu0 %v85_v31, %s610_s13  ;;  %159 = vmatpush1.msra.mxu0 %v50_v35 }
  0x1f   :  { %160 = vmatprep.subr.mxu0 %v609_v0 }
  0x20   :  { %161 = vmatpush1.msra.mxu0 %v49_v36 }
  0x21   :  { %162 = vmatprep.subr.mxu0 %v609_v0 }
  0x22   :  { %163 = vmatpush1.msra.mxu0 %v48_v37 }
  0x23   :  { %164 = vmatprep.subr.mxu0 %v609_v0 }
  0x24   :  { %165 = vmatpush1.msra.mxu0 %v47_v38 }
  0x25   :  { %166 = vmatprep.subr.mxu0 %v609_v0 }
  0x26   :  { %167 = vmatpush1.msra.mxu0 %v46_v39 }
  0x27   :  { %168 = vmatprep.subr.mxu0 %v609_v0 }
  0x28   :  { %169 = vmatpush1.msra.mxu0 %v45_v40 }
  0x29   :  { %170 = vmatprep.subr.mxu0 %v609_v0 }
  0x2a   :  { %171 = vmatpush1.msra.mxu0 %v44_v41 }
  0x2b   :  { %172 = vmatprep.subr.mxu0 %v609_v0 }
  0x2c   :  { %173 = vmatpush1.msra.mxu0 %v43_v42 }
  0x2d   :  { %174 = vmatprep.subr.mxu0 %v609_v0 }
  0x2e   :  { %175 = vmatpush1.msra.mxu0 %v42_v43 }
  0x2f   :  { %186 = vmatprep.subr.mxu0 %v609_v0 }
  0x30   :  { %187 = vmatpush2.msra.mxu0 %v68_v44 }
  0x31   :  { %188 = vmatprep.subr.mxu0 %v609_v0 }
  0x32   :  { %189 = vmatpush2.msra.mxu0 %v67_v45 }
  0x33   :  { %190 = vmatprep.subr.mxu0 %v609_v0 }
  0x34   :  { %191 = vmatpush2.msra.mxu0 %v66_v46 }
  0x35   :  { %192 = vmatprep.subr.mxu0 %v609_v0 }
  0x36   :  { %193 = vmatpush2.msra.mxu0 %v65_v47 }
  0x37   :  { %194 = vmatprep.subr.mxu0 %v609_v0 }
  0x38   :  { %195 = vmatpush2.msra.mxu0 %v64_v48 }
  0x39   :  { %196 = vmatprep.subr.mxu0 %v609_v0 }
  0x3a   :  { %197 = vmatpush2.msra.mxu0 %v63_v49 }
  0x3b   :  { %198 = vmatprep.subr.mxu0 %v609_v0 }
  0x3c   :  { %199 = vmatpush2.msra.mxu0 %v62_v50 }
  0x3d   :  { %200 = vmatprep.subr.mxu0 %v609_v0 }
  0x3e   :  { %201 = vmatpush2.msra.mxu0 %v61_v51 }
  0x3f   :  { %202 = vmatprep.subr.mxu0 %v609_v0 }
  0x40   :  { %203 = vmatpush2.msra.mxu0 %v60_v52 }
  0x41   :  { %204 = vmatprep.subr.mxu0 %v609_v0 }
  0x42   :  { %205 = vmatpush2.msra.mxu0 %v59_v53  ;;  %v269_v53 = vld [vmem:[#allocation2] sm:$0xff] }
  0x43   :  { %206 = vmatprep.subr.mxu0 %v609_v0 }
  0x44   :  { %207 = vmatpush2.msra.mxu0 %v58_v54 }
  0x83   :  { %v89_v55 = vpop.permute.xlu1 %88 }
  0x84   :  { %v87_v56 = vpop.permute.xlu0 %86  ;;  %v123_v4 = vsel %vm121_vm4, %v660_v1, %v89_v55  ;;  %v267_v1 = vld [vmem:[%s917_s2 + $0x70] sm:$0xff] }
  0x85   :  { %v122_v60 = vsel %vm121_vm4, %v668_v3, %v87_v56  ;;  %516 = vmatpush3.msra.mxu1 %v267_v1 }
  0x86   :  { %517 = vmatprep.subr.mxu1 %v609_v0 }
  0x87   :  { %v112_v57 = vpop.permute.xlu1 %111 }
  0x88   :  { %v110_v58 = vpop.permute.xlu0 %109  ;;  %v128_v61 = vsel %vm126_vm2, %v89_v55, %v112_v57 }
  0x89   :  { %v127_v59 = vsel %vm126_vm2, %v87_v56, %v110_v58 }
  0x8a   :  { %489 = vmatprep.mubr.msk.f32.mxu0 %vm131_vm3, %v127_v59 }
  0x8b   :  { %209 = vmatmul.mubr.f32.vlgmr.msra.gmra.mxu0 %v122_v60  ;;  %v114_v62 = vpop.permute.xlu1 %113 }
  0x8c   :  { %490 = vmatprep.mubr.msk.f32.mxu0 %vm131_vm3, %v128_v61  ;;  %v91_v63 = vpop.permute.xlu0 %90 }
  0x8d   :  { %v129_v2 = vsel %vm126_vm2, %v91_v63, %v114_v62  ;;  %v124_v5 = vsel %vm121_vm4, %v676_v8, %v91_v63  ;;  %v266_v8 = vld [vmem:[%s917_s2 + $0x68] sm:$0xff] }
  0x8e   :  { %518 = vmatpush3.msra.mxu1 %v266_v8  ;;  %v270_v8 = vld [vmem:[%s919_s4] sm:$0x1]  ;;  %s584_s4 = scalar_lea.vmem %s478_s24, 512 }
  0x8f   :  { %214 = vmatmul.mubr.f32.gmra.mxu0 %v123_v4  ;;  %v116_v6 = vpop.permute.xlu1 %115  ;;  %519 = vmatprep.subr.mxu1 %v609_v0  ;;  %p585_p5 = scmp.ne.s32.totalorder %s478_s24, %s584_s4  ;;  %p590_p7 = scmp.lt.s32.totalorder %s584_s4, %s584_s4 }
  0x90   :  { %491 = vmatprep.mubr.msk.f32.mxu0 %vm131_vm3, %v129_v2  ;;  %v93_v3 = vpop.permute.xlu0 %92  ;;  %520 = vmatpush3.msra.mxu1 %v265_v11  ;;  %v613_v2 = vmov 1966171168  }
  0x91   :  { %v130_v7 = vsel %vm126_vm2, %v93_v3, %v116_v6  ;;  %v125_v10 = vsel %vm121_vm4, %v681_v9, %v93_v3  ;;  %521 = vmatprep.subr.mxu1 %v609_v0  ;;  %v264_v9 = vld [vmem:[%s917_s2 + $0x58] sm:$0xff]  ;;  %v426_v4 = vunpack.c.l.s4 %v613_v2  ;;  %p591_p8 = por %p590_p7, %p589_p6 }
  0x92   :  { %522 = vmatpush3.msra.mxu1 %v264_v9 }
  0x93   :  { %219 = vmatmul.mubr.f32.gmra.mxu0 %v124_v5  ;;  %523 = vmatprep.subr.mxu1 %v609_v0  ;;  %v428_v5 = vlaneseq  ;;  %v427_v6 = vunpack.c.0.s8 %v426_v4  ;;  %p592_p9 = pnand %p591_p8, %p585_p5 }
  0x94   :  { %492 = vmatprep.mubr.msk.f32.mxu0 %vm131_vm3, %v130_v7  ;;  %524 = vmatpush3.msra.mxu1 %v263_v12 }
  0x95   :  { %525 = vmatprep.subr.mxu1 %v609_v0  ;;  %v429_v3 = vshrl.u32 %v428_v5, 7 }
  0x96   :  { %526 = vmatpush3.msra.mxu1 %v262_v13  ;;  %v271_v13 = vld [vmem:[%s920_s5] sm:$0x1] }
  0x97   :  { %224 = vmatmul.mubr.f32.gmra.mxu0 %v125_v10  ;;  %527 = vmatprep.subr.mxu1 %v609_v0  ;;  %v430_v7 = vsub.s32 %v427_v6, %v429_v3  ;;  %v447_v9 = vsub.s32 0, %v429_v3 }
  0x98   :  { %528 = vmatpush3.msra.mxu1 %v261_v14 }
  0x99   :  { %529 = vmatprep.subr.mxu1 %v609_v0 }
  0x9a   :  { %530 = vmatpush3.msra.mxu1 %v260_v15 }
  0x9b   :  { %531 = vmatprep.subr.mxu1 %v609_v0 }
  0x9c   :  { %532 = vmatpush3.msra.mxu1 %v259_v16 }
  0x9d   :  { %533 = vmatprep.subr.mxu1 %v609_v0 }
  0x9e   :  { %534 = vmatpush3.msra.mxu1 %v258_v17 }
  0x9f   :  { %535 = vmatprep.subr.mxu1 %v609_v0 }
  0xa0   :  { %536 = vmatpush3.msra.mxu1 %v257_v18 }
  0xa1   :  { %537 = vmatprep.subr.mxu1 %v609_v0 }
  0xa2   :  { %538 = vmatpush3.msra.mxu1 %v256_v19 }
  0xa3   :  { %539 = vmatprep.subr.mxu1 %v609_v0 }
  0xa4   :  { %540 = vmatpush3.msra.mxu1 %v255_v20 }
  0xa5   :  { %541 = vmatprep.subr.mxu1 %v609_v0 }
  0xa6   :  { %542 = vmatpush3.msra.mxu1 %v254_v21 }
  0xa7   :  { %543 = vmatprep.subr.mxu1 %v609_v0 }
  0xa8   :  { %544 = vmatpush3.msra.mxu1 %v253_v22 }
  0xa9   :  { %548 = vmatprep.subr.mxu1 %v609_v0 }
 0x14b   :  { %v892_v23 = vpop.f32.mrf.mxu0 }
 0x14c   :  { %v238_v29 = vmul.f32 %v892_v23, %v892_v23 }
 0x14d   :  { %v212_v24 = vpop.f32.mrf.mxu0 }
 0x14f   :  { %v894_v25 = vpop.f32.mrf.mxu0 }
 0x150   :  { %v239_v27 = vmul.f32 %v894_v25, %v894_v25  ;;  %v229_v30 = vadd.f32 %v894_v25, %v892_v23 }
 0x151   :  { %v217_v26 = vpop.f32.mrf.mxu0 }
 0x152   :  { %v242_v33 = vadd.f32 %v239_v27, %v238_v29 }
 0x153   :  { %v220_v28 = vpop.f32.mrf.mxu0 }
 0x154   :  { %v240_v31 = vmul.f32 %v220_v28, %v220_v28  ;;  %v230_v34 = vadd.f32 %v229_v30, %v220_v28 }
 0x155   :  { %v222_v32 = vpop.f32.mrf.mxu0 }
 0x156   :  { %v243_v36 = vadd.f32 %v242_v33, %v240_v31 }
 0x157   :  { %v225_v35 = vpop.f32.mrf.mxu0 }
 0x158   :  { %v231_v37 = vadd.f32 %v230_v34, %v225_v35  ;;  %v241_v38 = vmul.f32 %v225_v35, %v225_v35 }
 0x159   :  { %v227_v39 = vpop.f32.mrf.mxu0 }
 0x15a   :  { %v232_v40 = vrot.slane %v231_v37, 4  ;;  %v244_v41 = vadd.f32 %v243_v36, %v241_v38 }
 0x15c   :  { %v233_v42 = vadd.f32 %v232_v40, %v231_v37  ;;  %v245_v43 = vrot.slane %v244_v41, 4 }
 0x15e   :  { %v234_v44 = vrot.slane %v233_v42, 2  ;;  %v246_v45 = vadd.f32 %v245_v43, %v244_v41 }
 0x160   :  { %v235_v46 = vadd.f32 %v234_v44, %v233_v42  ;;  %v247_v47 = vrot.slane %v246_v45, 2 }
 0x162   :  { %v236_v48 = vrot.slane %v235_v46, 1  ;;  %v248_v49 = vadd.f32 %v247_v47, %v246_v45 }
 0x164   :  { %v249_v50 = vrot.slane %v248_v49, 1  ;;  %v237_v51 = vadd.f32 %v236_v48, %v235_v46 }
 0x166   :  { %v250_v52 = vadd.f32 %v249_v50, %v248_v49 }
 0x168   :  { %v252_v54 = vsel %vm251_vm6, %v237_v51, %v250_v52 }
 0x169   :  { %546 = vmatmul.mubr.f32.vlgmr.msra.gmra.mxu1 %v252_v54 }
 0x16a   :  { %549 = vmatpush3.msra.mxu1 %v269_v53  ;;  %550 = vmatprep.mubr.msk.f32.mxu1 %vm612_vm5, %v609_v0 }
 0x229   :  { %v338_v55 = vpop.f32.mrf.mxu1 }
 0x22a   :  { %v342_v56 = vmul.f32 0.001953125, %v338_v55 }
 0x22b   :  { %v547_v57 = vpop.f32.mrf.mxu1 }
 0x22c   :  { %551 = vmatmul.mubr.msk.f32.vlgmr.msra.gmra.mxu1 %vm343_vm7, %v342_v56 }
 0x2ec   :  { %v413_v58 = vpop.f32.mrf.mxu1 }
 0x2ed   :  { %v417_v59 = vmul.f32 %v413_v58, %v413_v58 }
 0x2ee   :  { %v552_v60 = vpop.f32.mrf.mxu1 }
 0x2ef   :  { %v419_v61 = vrot.slane %v417_v59, 7 }
 0x2f1   :  { %v421_v62 = vsub.f32 %v413_v58, %v419_v61 }
 0x2f3   :  { %v422_v63 = vadd.f32 1e-05, %v421_v62 }
 0x2f5   :  { %562 = vrsqrt.f32 %v422_v63 }
 0x302   :  { %v563_v10 = vpop.eup %562 }
 0x303   :  { %v431_v0 = vrot.slane %v563_v10, %v430_v7 }
 0x305   :  { %v432_v1 = vcombine.high %v431_v0, %v431_v0 }
 0x307   :  { %v439_v11 = vrot.slane %v432_v1, %v430_v7 }
 0x309   :  { %v441_v12 = vmul.f32 %v439_v11, %v270_v8 }
 0x30b   :  { %v442_v14 = vmul.f32 %v441_v12, %v413_v58  ;;  %v448_v15 = vrot.slane %v441_v12, %v447_v9 }
 0x30d   :  { %v443_v16 = vsub.f32 %v271_v13, %v442_v14  ;;  %v450_v17 = vmul.f32 %v448_v15, %v892_v23  ;;  %v451_v18 = vmul.f32 %v448_v15, %v894_v25  ;;  %v452_v19 = vmul.f32 %v448_v15, %v220_v28 }
 0x30e   :  { %v453_v20 = vmul.f32 %v448_v15, %v225_v35 }
 0x30f   :  { %v458_v21 = vrot.slane %v443_v16, %v447_v9 }
 0x311   :  { %v460_v22 = vadd.f32 %v458_v21, %v450_v17  ;;  %v461_v24 = vadd.f32 %v458_v21, %v451_v18  ;;  %v462_v26 = vadd.f32 %v458_v21, %v452_v19  ;;  %v463_v27 = vadd.f32 %v458_v21, %v453_v20 }
 0x313   :  { %v464_v29 = vmax.f32 %v460_v22, 0.0  ;;  %v465_v30 = vmax.f32 %v461_v24, 0.0  ;;  %v466_v31 = vmax.f32 %v462_v26, 0.0  ;;  %v467_v32 = vmax.f32 %v463_v27, 0.0 }
 0x315   :  { %468 = vst [vmem:[#allocation5] sm:$0xff] %v464_v29  ;;  %469 = vst [vmem:[#allocation5 + $0x8] sm:$0xff] %v465_v30 }
 0x316   :  { %470 = vst [vmem:[#allocation5 + $0x10] sm:$0xff] %v466_v31  ;;  %471 = vst [vmem:[#allocation5 + $0x18] sm:$0xff] %v467_v32 }
 0x317   :  { %595 = shalt.err (!%p592_p9)
}
 0x318   :  { %s615_s5 = smov 128   ;;  %s616_s25 = smov 8  }
 0x319   :  { %483 = dma.vmem_to_hbm [thread:$0]  %s478_s24, 512, %s921_s6, [#allocation4], %s615_s5, %s615_s5, %s616_s25  }
 0x31a   :  { %606 = dma.done.wait [#allocation4], 512  }
 0x31b   :  { %607 = vsyncadd [#allocation4], 4294966784 }
 0x31c   :  { %487 = vsyncpa [#allocation3], 1 }
 0x31d   :  { %488 = vsyncpa [#allocation4], 1 }

</bundles_post_ra>
